<compile_context>
chip_gen: v5e
topology: v5e:2x2
jax: 0.10.0
libtpu: 0.0.40
codegen_flags: <defaults>
</compile_context>

<pallas_src>
import functools

import jax
import jax.numpy as jnp
from jax.experimental import pallas as pl
from jax.experimental.pallas import tpu as pltpu


def _angle_loss_kernel(cos_ref, psi_ref, tgt_ref, lamb_ref, loss_ref, *, gamma):
    """One (TM, C) batch tile: target-column margin blend + row log-softmax."""
    cos = cos_ref[...].astype(jnp.float32)            # (TM, C)
    psi = psi_ref[...].astype(jnp.float32)            # (TM, C)
    tgt = tgt_ref[...]                                # (TM, 1) int32
    lamb = lamb_ref[0]                                # scalar f32 (SMEM)

    # one-hot target mask == index.scatter_(1, target, 1).bool()
    col = jax.lax.broadcasted_iota(jnp.int32, cos.shape, 1)
    onehot = col == tgt                               # (TM, C) bool

    # output = cos_theta everywhere; at the target column blend toward psi:
    #   out_t = cos_t - cos_t/(1+lamb) + psi_t/(1+lamb) = cos_t + (psi_t - cos_t)*f
    f = 1.0 / (1.0 + lamb)
    output = jnp.where(onehot, cos + (psi - cos) * f, cos)

    # stable row-wise log-softmax, gathering only the target logit
    m = jnp.max(output, axis=1, keepdims=True)                          # (TM, 1)
    z = output - m
    lse = jnp.log(jnp.sum(jnp.exp(z), axis=1, keepdims=True))           # (TM, 1)
    z_t = jnp.sum(jnp.where(onehot, z, 0.0), axis=1, keepdims=True)     # (TM, 1)
    logpt = z_t - lse                                                   # (TM, 1)

    if gamma == 0:
        loss = -logpt                                  # (1 - pt)**0 == 1
    else:
        pt = jnp.clip(jnp.exp(logpt), 0.0, 1.0)        # guard pt>1 rounding for pow
        loss = -((1.0 - pt) ** gamma) * logpt

    loss_ref[...] = loss                               # (TM, 1)


def _pick_block_rows(n_rows, n_cols, itemsize, budget_bytes):
    """Largest sublane-aligned row tile whose double-buffered cos+psi blocks fit
    `budget_bytes` of VMEM (2 inputs x 2 pipeline buffers x TM*C*itemsize)."""
    align = max(8, 32 // itemsize)        # sublane packing: f32 -> 8, bf16 -> 16
    tm = budget_bytes // (4 * n_cols * itemsize)
    tm = max(align, (tm // align) * align)
    tm = min(tm, 1024)                    # keep per-step DMA a few MB
    if n_rows <= tm:
        # single tile covers the batch: full-dim block (or aligned-up, padded)
        return n_rows if n_rows < align else ((n_rows + align - 1) // align) * align
    return tm


def angle_loss(cos_theta, psi_theta, target, *, it=1, gamma=0, eval=False,
               block_rows=None, vmem_input_budget=24 * 1024 * 1024):
    """Pallas implementation of AngleLoss.forward((cos_theta, psi_theta), target)."""
    N, C = cos_theta.shape
    # lambda annealing, done on host exactly like the PyTorch module
    lamb = max(5.0, 1500.0 / (1.0 + 0.1 * it))
    tgt = target.reshape(N, 1).astype(jnp.int32)
    lamb_arr = jnp.array([lamb], dtype=jnp.float32)

    itemsize = max(jnp.dtype(cos_theta.dtype).itemsize,
                   jnp.dtype(psi_theta.dtype).itemsize)
    tm = block_rows if block_rows is not None else _pick_block_rows(
        N, C, itemsize, vmem_input_budget)
    grid = (pl.cdiv(N, tm),)

    per_sample = pl.pallas_call(
        functools.partial(_angle_loss_kernel, gamma=gamma),
        grid=grid,
        out_shape=jax.ShapeDtypeStruct((N, 1), jnp.float32),
        in_specs=[
            pl.BlockSpec((tm, C), lambda i: (i, 0)),     # cos_theta (native dtype)
            pl.BlockSpec((tm, C), lambda i: (i, 0)),     # psi_theta (native dtype)
            pl.BlockSpec((tm, 1), lambda i: (i, 0)),     # target (int32)
            pl.BlockSpec(memory_space=pltpu.SMEM),       # lamb scalar
        ],
        out_specs=pl.BlockSpec((tm, 1), lambda i: (i, 0)),  # per-sample loss
        compiler_params=pltpu.CompilerParams(
            dimension_semantics=("parallel",),           # megacore shard on v7x
            vmem_limit_bytes=48 * 1024 * 1024,           # < v7x 64 MiB physical
        ),
    )(cos_theta, psi_theta, tgt, lamb_arr)

    if eval:
        return per_sample.reshape(-1)                    # loss.view(-1), no mean
    # finish the batch mean in plain JAX (N scalars -> free; keeps axis parallel)
    return jnp.mean(per_sample)


def angle_loss_ref(cos_theta, psi_theta, target, it=1, gamma=0):
    """Pure-JAX reference mirroring the PyTorch forward (eval=False)."""
    lamb = max(5.0, 1500.0 / (1.0 + 0.1 * it))
    onehot = jax.nn.one_hot(target, cos_theta.shape[1], dtype=jnp.bool_)
    f = 1.0 / (1.0 + lamb)
    output = jnp.where(onehot, cos_theta + (psi_theta - cos_theta) * f, cos_theta)
    logp = jax.nn.log_softmax(output, axis=1)
    logpt = jnp.take_along_axis(logp, target[:, None], axis=1)[:, 0]
    pt = jnp.exp(logpt)
    loss = -((1.0 - pt) ** gamma) * logpt
    return loss.mean()


if __name__ == "__main__":
    key = jax.random.PRNGKey(0)
    k1, k2, k3 = jax.random.split(key, 3)

    N, C = 24, 128  # batch, num_classes (small demo shapes)
    cos_theta = jnp.tanh(jax.random.normal(k1, (N, C), dtype=jnp.float32))  # in [-1, 1]
    psi_theta = jax.random.normal(k2, (N, C), dtype=jnp.float32)
    target = jax.random.randint(k3, (N,), 0, C, dtype=jnp.int32)

    # 1) training path (mean loss), auto tile size
    loss = jax.block_until_ready(angle_loss(cos_theta, psi_theta, target, it=1, gamma=0))
    ref = angle_loss_ref(cos_theta, psi_theta, target, it=1, gamma=0)
    assert jnp.allclose(loss, ref, atol=1e-5, rtol=1e-5), (loss, ref)

    # 2) multi-tile path with a partial last tile (N=20, 8-row blocks) and gamma=2
    Np = 20
    loss_p = jax.block_until_ready(
        angle_loss(cos_theta[:Np], psi_theta[:Np], target[:Np],
                   it=7, gamma=2, block_rows=8))
    ref_p = angle_loss_ref(cos_theta[:Np], psi_theta[:Np], target[:Np], it=7, gamma=2)
    assert jnp.allclose(loss_p, ref_p, atol=1e-5, rtol=1e-5), (loss_p, ref_p)

    # 3) eval path: per-sample loss, no mean
    per_sample = jax.block_until_ready(
        angle_loss(cos_theta, psi_theta, target, it=1, gamma=0, eval=True))
    assert per_sample.shape == (N,)
    assert jnp.allclose(jnp.mean(per_sample), ref, atol=1e-5, rtol=1e-5)

    # 4) bf16 inputs stream at half the HBM bytes; kernel up-casts internally
    cos_bf = cos_theta.astype(jnp.bfloat16)
    psi_bf = psi_theta.astype(jnp.bfloat16)
    loss_bf = jax.block_until_ready(angle_loss(cos_bf, psi_bf, target, it=1, gamma=0))
    ref_bf = angle_loss_ref(cos_bf.astype(jnp.float32), psi_bf.astype(jnp.float32),
                            target, it=1, gamma=0)
    assert jnp.allclose(loss_bf, ref_bf, atol=1e-5, rtol=1e-5), (loss_bf, ref_bf)

    print("KERNEL_OK")
</pallas_src>

<mosaic_0001>
module attributes {stable_mosaic.version = 11 : i64} {
  func.func @_angle_loss_kernel(%arg0: i32, %arg1: memref<24x128xf32, #tpu.memory_space<vmem>>, %arg2: memref<24x128xf32, #tpu.memory_space<vmem>>, %arg3: memref<24x1xi32, #tpu.memory_space<vmem>>, %arg4: memref<1xf32, #tpu.memory_space<smem>>, %arg5: memref<24x1xf32, #tpu.memory_space<vmem>>) attributes {dimension_semantics = [#tpu.dimension_semantics<parallel>], iteration_bounds = array<i64: 1>, scalar_prefetch = 0 : i64, scratch_operands = 0 : i64, tpu.core_type = #tpu.core_type<tc>, window_params = [{transform_indices = @transform_0, window_bounds = array<i64: 24, 128>}, {transform_indices = @transform_1, window_bounds = array<i64: 24, 128>}, {transform_indices = @transform_2, window_bounds = array<i64: 24, 1>}, {transform_indices = @transform_3, window_bounds = array<i64: 1>}, {transform_indices = @transform_4, window_bounds = array<i64: 24, 1>}]} {
    %c0 = arith.constant 0 : index
    %c0_0 = arith.constant 0 : index
    %0 = vector.load %arg1[%c0, %c0_0] : memref<24x128xf32, #tpu.memory_space<vmem>>, vector<24x128xf32>
    %c0_1 = arith.constant 0 : index
    %c0_2 = arith.constant 0 : index
    %1 = vector.load %arg2[%c0_1, %c0_2] : memref<24x128xf32, #tpu.memory_space<vmem>>, vector<24x128xf32>
    %c0_3 = arith.constant 0 : index
    %c0_4 = arith.constant 0 : index
    %2 = vector.load %arg3[%c0_3, %c0_4] : memref<24x1xi32, #tpu.memory_space<vmem>>, vector<24x1xi32>
    %c0_5 = arith.constant 0 : index
    %3 = memref.load %arg4[%c0_5] : memref<1xf32, #tpu.memory_space<smem>>
    %4 = tpu.iota {dimensions = array<i32: 1>} : vector<24x128xi32>
    %5 = vector.broadcast %2 : vector<24x1xi32> to vector<24x128xi32>
    %6 = arith.cmpi eq, %4, %5 : vector<24x128xi32>
    %cst = arith.constant 1.000000e+00 : f32
    %7 = arith.addf %cst, %3 : f32
    %cst_6 = arith.constant 1.000000e+00 : f32
    %8 = arith.divf %cst_6, %7 : f32
    %9 = arith.subf %1, %0 : vector<24x128xf32>
    %10 = vector.broadcast %8 : f32 to vector<24x128xf32>
    %11 = arith.mulf %9, %10 : vector<24x128xf32>
    %12 = arith.addf %0, %11 : vector<24x128xf32>
    %13 = arith.select %6, %12, %0 : vector<24x128xi1>, vector<24x128xf32>
    %cst_7 = arith.constant dense<0xFF800000> : vector<24xf32>
    %14 = vector.multi_reduction <maximumf>, %13, %cst_7 [1] : vector<24x128xf32> to vector<24xf32>
    %15 = vector.shape_cast %14 : vector<24xf32> to vector<24x1xf32>
    %16 = vector.broadcast %15 : vector<24x1xf32> to vector<24x128xf32>
    %17 = arith.subf %13, %16 : vector<24x128xf32>
    %18 = math.exp %17 : vector<24x128xf32>
    %cst_8 = arith.constant dense<0.000000e+00> : vector<24xf32>
    %19 = vector.multi_reduction <add>, %18, %cst_8 [1] : vector<24x128xf32> to vector<24xf32>
    %20 = vector.shape_cast %19 : vector<24xf32> to vector<24x1xf32>
    %21 = math.log %20 : vector<24x1xf32>
    %cst_9 = arith.constant 0.000000e+00 : f32
    %22 = vector.broadcast %cst_9 : f32 to vector<24x128xf32>
    %23 = arith.select %6, %17, %22 : vector<24x128xi1>, vector<24x128xf32>
    %cst_10 = arith.constant dense<0.000000e+00> : vector<24xf32>
    %24 = vector.multi_reduction <add>, %23, %cst_10 [1] : vector<24x128xf32> to vector<24xf32>
    %25 = vector.shape_cast %24 : vector<24xf32> to vector<24x1xf32>
    %26 = arith.subf %25, %21 : vector<24x1xf32>
    %cst_11 = arith.constant 0.000000e+00 : f32
    %27 = vector.broadcast %cst_11 : f32 to vector<24x1xf32>
    %28 = arith.subf %27, %26 : vector<24x1xf32>
    %c0_12 = arith.constant 0 : index
    %c0_13 = arith.constant 0 : index
    %29 = vector.load %arg5[%c0_12, %c0_13] : memref<24x1xf32, #tpu.memory_space<vmem>>, vector<24x1xf32>
    tpu.vector_store %arg5[%c0_12, %c0_13], %28 {strides = array<i32>} : memref<24x1xf32, #tpu.memory_space<vmem>>, vector<24x1xf32>,
    return
  }
  func.func @transform_0(%arg0: i32) -> (i32, i32) {
    %c0_i32 = arith.constant 0 : i32
    %c0_i32_0 = arith.constant 0 : i32
    return %arg0, %c0_i32 : i32, i32
  }
  func.func @transform_1(%arg0: i32) -> (i32, i32) {
    %c0_i32 = arith.constant 0 : i32
    %c0_i32_0 = arith.constant 0 : i32
    return %arg0, %c0_i32 : i32, i32
  }
  func.func @transform_2(%arg0: i32) -> (i32, i32) {
    %c0_i32 = arith.constant 0 : i32
    %c0_i32_0 = arith.constant 0 : i32
    return %arg0, %c0_i32 : i32, i32
  }
  func.func @transform_3(%arg0: i32) -> i32 {
    %c0_i32 = arith.constant 0 : i32
    %c0_i32_0 = arith.constant 0 : i32
    return %c0_i32 : i32
  }
  func.func @transform_4(%arg0: i32) -> (i32, i32) {
    %c0_i32 = arith.constant 0 : i32
    %c0_i32_0 = arith.constant 0 : i32
    return %arg0, %c0_i32 : i32, i32
  }
}

</mosaic_0001>

<bundles_post_ra>
// kernel: tpu_custom_call.1
= control target key start
LH: loop header
LB: loop body
LE: loop exit
PB: predicated region body
PF: predicated region fallthrough
CT: control target
= control target key end

     0   :  { %10 = vsyncpa [#allocation4], 0  ;;  %s187_s18 = smov [#allocation3]   ;;  %s188_s20 = smov 128   ;;  %s258_s0 = inlined_call_operand.vmem [shape: f32[24,128], index: 0, kind: input, shape index: {}]   ;;  %s259_s1 = inlined_call_operand.hbm [shape: f32[24,128], index: 1, kind: input, shape index: {}]   ;;  %s260_s2 = inlined_call_operand.vmem [shape: s32[24,1], index: 2, kind: input, shape index: {}]   ;;  %s261_s3 = inlined_call_operand.<no memory space> [shape: f32[1], index: 3, kind: input, shape index: {}]   ;;  %s262_s4 = inlined_call_operand.vmem [shape: f32[24,1], index: 4, kind: output, shape index: {}]  }
   0x1   :  { %s17_s17 = sshll.u32 %s259_s1, 4  ;;  %s19_s19 = sshll.u32 %s187_s18, 4  ;;  %s18_s17 = int_to_ptr.hbm [resolvable:$true] %s17_s17  ;;  %s20_s19 = int_to_ptr.vmem [resolvable:$true] %s19_s19 }
   0x2   :  { %s189_s21 = smov 8  }
   0x3   :  { %25 = dma.hbm_to_vmem [thread:$0]  %s18_s17, 384, %s20_s19, [#allocation4], %s188_s20, %s188_s20, %s189_s21  }
   0x4   :  { %185 = dma.done.wait [#allocation4], 384  }
   0x5   :  { %186 = vsyncadd [#allocation4], 4294966912  ;;  %s58_s24 = sadd.f32 1.0, %s261_s3  ;;  %v190_v0 = vmov 0   ;;  %v40_v2 = vld [vmem:[%s260_s2] sm:$0xff]  ;;  %v42_v3 = vld [vmem:[%s260_s2 + $0x10] sm:$0xff]  ;;  %v44_v19 = vlaneseq }
   0x6   :  { %145 = vset.pattern.permute.xlu0 %v190_v0  ;;  %146 = vset.pattern.permute.xlu1 %v190_v0  ;;  %v41_v9 = vld [vmem:[%s260_s2 + $0x8] sm:$0xff]  ;;  %v34_v15 = vld [vmem:[%s258_s0] sm:$0xff]  ;;  %v36_v29 = vld [vmem:[%s258_s0 + $0x10] sm:$0xff]  ;;  %vm130_vm7 = vcmask 7168  }
   0x7   :  { %v59_v1 = vstv %s58_s24  ;;  %47 = vperm.xlu0 %145, %v40_v2   ;;  %53 = vperm.xlu1 %146, %v42_v3   ;;  %v37_v16 = vld [vmem:[#allocation3] sm:$0xff]  ;;  %v35_v21 = vld [vmem:[%s258_s0 + $0x8] sm:$0xff]  ;;  %v45_v23 = vand.u32 127, %v44_v19  ;;  %v39_v30 = vld [vmem:[#allocation3 + $0x10] sm:$0xff] }
   0x8   :  { %147 = vrcp.f32 %v59_v1  ;;  %v71_v6 = vand.u32 2147483648, %v59_v1  ;;  %vm65_vm0 = vweird.f32 %v59_v1  ;;  %v69_v8 = vand.u32 2147483647, %v59_v1  ;;  %v38_v22 = vld [vmem:[#allocation3 + $0x8] sm:$0xff] }
   0x9   :  { %v75_v17 = vsub.f32 %v37_v16, %v34_v15  ;;  %v76_v24 = vsub.f32 %v38_v22, %v35_v21  ;;  %v77_v31 = vsub.f32 %v39_v30, %v36_v29 }
   0xa   :  { %v72_v11 = vor.u32 1.1754944e-38, %v71_v6  ;;  %vm70_vm3 = vcmp.eq.f32.partialorder %v69_v8, 8.507059e+37 }
   0xe   :  { %v148_v4 = vpop.eup %147 }
   0xf   :  { %v61_v5 = vmul.f32 %v148_v4, %v59_v1  ;;  %vm66_vm1 = vweird.f32 %v148_v4  ;;  %50 = vperm.xlu0 %145, %v41_v9  }
  0x10   :  { %vm67_vm2 = vmor %vm65_vm0, %vm66_vm1 }
  0x11   :  { %v62_v7 = vsub.f32 1.0, %v61_v5 }
  0x13   :  { %v63_v10 = vmul.f32 %v148_v4, %v62_v7 }
  0x15   :  { %v64_v12 = vadd.f32 %v148_v4, %v63_v10 }
  0x17   :  { %v68_v13 = vsel %vm67_vm2, %v148_v4, %v64_v12 }
  0x18   :  { %v73_v14 = vsel %vm70_vm3, %v72_v11, %v68_v13 }
  0x19   :  { %139 = vpush %v73_v14 }
  0x4a   :  { %s140_s5 = spop %139 }
  0x4b   :  { %v78_v18 = vstv %s140_s5 }
  0x4c   :  { %v79_v20 = vmul.f32 %v78_v18, %v75_v17  ;;  %v80_v27 = vmul.f32 %v78_v18, %v76_v24  ;;  %v81_v34 = vmul.f32 %v78_v18, %v77_v31 }
  0x4e   :  { %v82_v25 = vadd.f32 %v79_v20, %v34_v15  ;;  %v83_v32 = vadd.f32 %v80_v27, %v35_v21  ;;  %v84_v37 = vadd.f32 %v81_v34, %v36_v29 }
  0x79   :  { %v48_v26 = vpop.permute.xlu0 %47  ;;  %v54_v36 = vpop.permute.xlu1 %53 }
  0x7a   :  { %vm55_vm4 = vcmp.eq.s32.totalorder %v45_v23, %v48_v26  ;;  %vm57_vm6 = vcmp.eq.s32.totalorder %v45_v23, %v54_v36 }
  0x7b   :  { %v85_v28 = vsel %vm55_vm4, %v82_v25, %v34_v15  ;;  %v87_v38 = vsel %vm57_vm6, %v84_v37, %v36_v29 }
  0x7c   :  { %88 = vmax.xlane.f32.xlu1 %v85_v28 }
  0x81   :  { %v51_v33 = vpop.permute.xlu0 %50 }
  0x82   :  { %vm56_vm5 = vcmp.eq.s32.totalorder %v45_v23, %v51_v33 }
  0x83   :  { %v86_v35 = vsel %vm56_vm5, %v83_v32, %v35_v21 }
  0x84   :  { %90 = vmax.xlane.f32.xlu2 %v86_v35 }
  0x8c   :  { %92 = vmax.xlane.f32.xlu2 %v87_v38 }
  0xef   :  { %v89_v39 = vpop.xlane.xlu1 %88 }
  0xf0   :  { %v94_v40 = vsub.f32 %v85_v28, %v89_v39 }
  0xf2   :  { %v97_v41 = vmul.f32 1.442695, %v94_v40  ;;  %v115_v42 = vsel %vm55_vm4, %v94_v40, 0.0 }
  0xf3   :  { %118 = vadd.xlane.f32.xlu2 %v115_v42 }
  0xf4   :  { %149 = vpow2.f32 %v97_v41 }
  0xf7   :  { %v91_v43 = vpop.xlane.xlu2 %90 }
  0xf8   :  { %v95_v44 = vsub.f32 %v86_v35, %v91_v43 }
  0xfa   :  { %v150_v45 = vpop.eup %149  ;;  %v99_v46 = vmul.f32 1.442695, %v95_v44  ;;  %v116_v52 = vsel %vm56_vm5, %v95_v44, 0.0 }
  0xfb   :  { %103 = vadd.xlane.f32.xlu0 %v150_v45 }
  0xfc   :  { %151 = vpow2.f32 %v99_v46 }
  0xff   :  { %v93_v47 = vpop.xlane.xlu2 %92 }
 0x100   :  { %v96_v48 = vsub.f32 %v87_v38, %v93_v47 }
 0x102   :  { %v152_v49 = vpop.eup %151  ;;  %v101_v50 = vmul.f32 1.442695, %v96_v48  ;;  %v117_v53 = vsel %vm57_vm6, %v96_v48, 0.0 }
 0x103   :  { %105 = vadd.xlane.f32.xlu2 %v152_v49 }
 0x104   :  { %153 = vpow2.f32 %v101_v50 }
 0x10a   :  { %v154_v51 = vpop.eup %153 }
 0x10b   :  { %107 = vadd.xlane.f32.xlu2 %v154_v51 }
 0x113   :  { %120 = vadd.xlane.f32.xlu2 %v116_v52 }
 0x11b   :  { %122 = vadd.xlane.f32.xlu2 %v117_v53 }
 0x166   :  { %v119_v54 = vpop.xlane.xlu2 %118 }
 0x16e   :  { %v104_v55 = vpop.xlane.xlu0 %103 }
 0x16f   :  { %155 = vlog2.f32 %v104_v55 }
 0x175   :  { %v156_v56 = vpop.eup %155 }
 0x176   :  { %v110_v57 = vmul.f32 0.6931472, %v156_v56  ;;  %v106_v58 = vpop.xlane.xlu2 %105 }
 0x177   :  { %157 = vlog2.f32 %v106_v58 }
 0x178   :  { %v124_v59 = vsub.f32 %v119_v54, %v110_v57 }
 0x17a   :  { %v127_v60 = vsub.f32 0.0, %v124_v59 }
 0x17c   :  { %131 = vst.msk [vmem:[%s262_s4] sm:$0xff] %vm130_vm7, %v127_v60 }
 0x17d   :  { %v158_v62 = vpop.eup %157 }
 0x17e   :  { %v108_v61 = vpop.xlane.xlu2 %107  ;;  %v112_v63 = vmul.f32 0.6931472, %v158_v62 }
 0x17f   :  { %159 = vlog2.f32 %v108_v61 }
 0x185   :  { %v160_v3 = vpop.eup %159 }
 0x186   :  { %v121_v0 = vpop.xlane.xlu2 %120  ;;  %v114_v4 = vmul.f32 0.6931472, %v160_v3 }
 0x187   :  { %v125_v1 = vsub.f32 %v121_v0, %v112_v63 }
 0x189   :  { %v128_v2 = vsub.f32 0.0, %v125_v1 }
 0x18b   :  { %132 = vst.msk [vmem:[%s262_s4 + $0x8] sm:$0xff] %vm130_vm7, %v128_v2 }
 0x18e   :  { %v123_v5 = vpop.xlane.xlu2 %122 }
 0x18f   :  { %v126_v6 = vsub.f32 %v123_v5, %v114_v4 }
 0x191   :  { %v129_v7 = vsub.f32 0.0, %v126_v6 }
 0x193   :  { %133 = vst.msk [vmem:[%s262_s4 + $0x10] sm:$0xff] %vm130_vm7, %v129_v7 }
 0x194   :  { %138 = vsyncpa [#allocation4], 1 }

</bundles_post_ra>
